<compile_context>
chip_gen: v7x
topology: tpu7x:2x2x1
jax: 0.10.0
libtpu: 0.0.40
codegen_flags: <defaults>
</compile_context>

<pallas_src>
import functools
import math

import jax
import jax.numpy as jnp
from jax import lax
from jax.experimental import pallas as pl
from jax.experimental.pallas import tpu as pltpu


# ----------------------------------------------------------------------------
# helpers
# ----------------------------------------------------------------------------
def _row_tile(n, pref=256):
    """Largest divisor of n that is <= pref (so BlockSpecs tile exactly)."""
    t = min(n, pref)
    while n % t:
        t -= 1
    return t


# ----------------------------------------------------------------------------
# Pallas kernels
# ----------------------------------------------------------------------------
def _mha_addnorm_kernel(xq_ref, xkv_ref, wq_ref, bq_ref, wk_ref, bk_ref,
                        wv_ref, bv_ref, wo_ref, bo_ref, g_ref, beta_ref,
                        o_ref, *, num_heads, causal, scale):
    """y = LayerNorm(x + MHA(x, mem, mem)) for one batch element."""
    x = xq_ref[0]       # (Tq, E)
    mem = xkv_ref[0]    # (Tk, E)

    # Fused QKV projections; fold 1/sqrt(head_dim) into q (cheaper than
    # scaling the (Tq, Tk) logits).
    q = (jnp.dot(x, wq_ref[...], preferred_element_type=jnp.float32)
         + bq_ref[...]) * scale
    k = jnp.dot(mem, wk_ref[...], preferred_element_type=jnp.float32) + bk_ref[...]
    v = jnp.dot(mem, wv_ref[...], preferred_element_type=jnp.float32) + bv_ref[...]

    Tq, E = q.shape
    Tk = k.shape[0]
    hd = E // num_heads
    wo = wo_ref[...]

    if causal:
        row = lax.broadcasted_iota(jnp.int32, (Tq, Tk), 0)
        col = lax.broadcasted_iota(jnp.int32, (Tq, Tk), 1)
        causal_bias = jnp.where(col > row, -jnp.inf, 0.0)

    # Static unroll over heads; the output projection is folded in per-head
    # (sum_h o_h @ Wo[h*hd:(h+1)*hd, :]) so no concatenate/relayout is needed.
    acc = None
    for h in range(num_heads):
        lo, hi = h * hd, (h + 1) * hd
        qh, kh, vh = q[:, lo:hi], k[:, lo:hi], v[:, lo:hi]
        logits = lax.dot_general(qh, kh, (((1,), (1,)), ((), ())),
                                 preferred_element_type=jnp.float32)
        if causal:
            logits = logits + causal_bias
        m = jnp.max(logits, axis=-1, keepdims=True)
        p = jnp.exp(logits - m)
        s = jnp.sum(p, axis=-1, keepdims=True)
        attn = p * pl.reciprocal(s, approx=True)
        oh = jnp.dot(attn, vh, preferred_element_type=jnp.float32)       # (Tq, hd)
        part = jnp.dot(oh, wo[lo:hi, :], preferred_element_type=jnp.float32)
        acc = part if acc is None else acc + part

    # residual + LayerNorm (eps = 1e-5, matching nn.LayerNorm defaults)
    y = x + acc + bo_ref[...]
    mean = jnp.mean(y, axis=-1, keepdims=True)
    var = jnp.mean((y - mean) * (y - mean), axis=-1, keepdims=True)
    o_ref[0] = (y - mean) * lax.rsqrt(var + 1e-5) * g_ref[...] + beta_ref[...]


def mha_addnorm(p, x_q, x_kv, num_heads, causal, gamma, beta):
    """x_q: (B, Tq, E), x_kv: (B, Tk, E) -> (B, Tq, E)."""
    B, Tq, E = x_q.shape
    Tk = x_kv.shape[1]
    hd = E // num_heads
    scale = 1.0 / math.sqrt(hd)
    kernel = functools.partial(_mha_addnorm_kernel, num_heads=num_heads,
                               causal=causal, scale=scale)
    row = lambda a: a.reshape(1, -1)
    w_spec = pl.BlockSpec((E, E), lambda i: (0, 0))
    b_spec = pl.BlockSpec((1, E), lambda i: (0, 0))
    return pl.pallas_call(
        kernel,
        out_shape=jax.ShapeDtypeStruct((B, Tq, E), jnp.float32),
        grid=(B,),
        in_specs=[
            pl.BlockSpec((1, Tq, E), lambda i: (i, 0, 0)),
            pl.BlockSpec((1, Tk, E), lambda i: (i, 0, 0)),
            w_spec, b_spec,   # Wq, bq
            w_spec, b_spec,   # Wk, bk
            w_spec, b_spec,   # Wv, bv
            w_spec, b_spec,   # Wo, bo
            b_spec, b_spec,   # gamma, beta
        ],
        out_specs=pl.BlockSpec((1, Tq, E), lambda i: (i, 0, 0)),
        compiler_params=pltpu.CompilerParams(dimension_semantics=("parallel",)),
    )(x_q, x_kv,
      p["wq"], row(p["bq"]), p["wk"], row(p["bk"]),
      p["wv"], row(p["bv"]), p["wo"], row(p["bo"]),
      row(gamma), row(beta))


def _ffn_addnorm_kernel(x_ref, w1_ref, b1_ref, w2_ref, b2_ref,
                        g_ref, beta_ref, o_ref):
    x = x_ref[...]
    h = jnp.dot(x, w1_ref[...], preferred_element_type=jnp.float32) + b1_ref[...]
    h = jnp.maximum(h, 0.0)                               # ReLU
    f = jnp.dot(h, w2_ref[...], preferred_element_type=jnp.float32) + b2_ref[...]
    y = x + f
    mean = jnp.mean(y, axis=-1, keepdims=True)
    var = jnp.mean((y - mean) * (y - mean), axis=-1, keepdims=True)
    o_ref[...] = (y - mean) * lax.rsqrt(var + 1e-5) * g_ref[...] + beta_ref[...]


def ffn_addnorm(x, w1, b1, w2, b2, gamma, beta):
    """LayerNorm(x + FFN(x)); x: (B, T, E). Row-tiled over B*T."""
    B, T, E = x.shape
    N = B * T
    F = w1.shape[1]
    tm = _row_tile(N)
    # TODO(synk): for large E/F the K dimension should also be tiled with a
    # VMEM accumulator + pl.when init/finalize; unnecessary at these sizes.
    out = pl.pallas_call(
        _ffn_addnorm_kernel,
        out_shape=jax.ShapeDtypeStruct((N, E), jnp.float32),
        grid=(N // tm,),
        in_specs=[
            pl.BlockSpec((tm, E), lambda i: (i, 0)),
            pl.BlockSpec((E, F), lambda i: (0, 0)),
            pl.BlockSpec((1, F), lambda i: (0, 0)),
            pl.BlockSpec((F, E), lambda i: (0, 0)),
            pl.BlockSpec((1, E), lambda i: (0, 0)),
            pl.BlockSpec((1, E), lambda i: (0, 0)),
            pl.BlockSpec((1, E), lambda i: (0, 0)),
        ],
        out_specs=pl.BlockSpec((tm, E), lambda i: (i, 0)),
        compiler_params=pltpu.CompilerParams(dimension_semantics=("parallel",)),
    )(x.reshape(N, E), w1, b1.reshape(1, F), w2, b2.reshape(1, E),
      gamma.reshape(1, E), beta.reshape(1, E))
    return out.reshape(B, T, E)


def _proj_logsoftmax_kernel(x_ref, w_ref, b_ref, o_ref):
    logits = (jnp.dot(x_ref[...], w_ref[...], preferred_element_type=jnp.float32)
              + b_ref[...])
    m = jnp.max(logits, axis=-1, keepdims=True)
    lse = jnp.log(jnp.sum(jnp.exp(logits - m), axis=-1, keepdims=True))
    o_ref[...] = logits - m - lse


def proj_logsoftmax(x, w, b):
    """log_softmax(x @ w + b); x: (N, E), w: (E, V). Row-tiled over N."""
    N, E = x.shape
    V = w.shape[1]
    tm = _row_tile(N)
    # TODO(synk): for a very large vocab, tile V as well and use an online
    # logsumexp; the full V row fits in VMEM at this size.
    return pl.pallas_call(
        _proj_logsoftmax_kernel,
        out_shape=jax.ShapeDtypeStruct((N, V), jnp.float32),
        grid=(N // tm,),
        in_specs=[
            pl.BlockSpec((tm, E), lambda i: (i, 0)),
            pl.BlockSpec((E, V), lambda i: (0, 0)),
            pl.BlockSpec((1, V), lambda i: (0, 0)),
        ],
        out_specs=pl.BlockSpec((tm, V), lambda i: (i, 0)),
        compiler_params=pltpu.CompilerParams(dimension_semantics=("parallel",)),
    )(x, w, b.reshape(1, V))


# ----------------------------------------------------------------------------
# Model composition (JAX glue around the fused Pallas kernels)
# ----------------------------------------------------------------------------
def positional_encoding(max_len, embed_dim):
    pos = jnp.arange(max_len, dtype=jnp.float32)[:, None]
    div = jnp.exp(
        jnp.arange(0, embed_dim, 2, dtype=jnp.float32)
        * (-math.log(10000.0) / embed_dim)
    )
    pe = jnp.zeros((max_len, embed_dim), jnp.float32)
    pe = pe.at[:, 0::2].set(jnp.sin(pos * div))
    pe = pe.at[:, 1::2].set(jnp.cos(pos * div))
    return pe  # (max_len, E)


def encoder_layer(p, x, num_heads):
    x = mha_addnorm(p["self_attn"], x, x, num_heads, False, p["ln1_g"], p["ln1_b"])
    x = ffn_addnorm(x, p["ffn_w1"], p["ffn_b1"], p["ffn_w2"], p["ffn_b2"],
                    p["ln2_g"], p["ln2_b"])
    return x


def decoder_layer(p, x, memory, num_heads):
    x = mha_addnorm(p["self_attn"], x, x, num_heads, True, p["ln1_g"], p["ln1_b"])
    x = mha_addnorm(p["encdec_attn"], x, memory, num_heads, False,
                    p["ln2_g"], p["ln2_b"])
    x = ffn_addnorm(x, p["ffn_w1"], p["ffn_b1"], p["ffn_w2"], p["ffn_b2"],
                    p["ln3_g"], p["ln3_b"])
    return x


def transformer_forward(params, src, tgt):
    """src: (S, B) int tokens, tgt: (T, B) int tokens -> (T, B, vocab) log-probs."""
    enc = params["encoder"]
    dec = params["decoder"]

    # ---------------- Encoder ----------------
    S, B = src.shape
    # TODO(synk): embedding gather + positional-encoding add stay in plain JAX.
    x = jnp.take(enc["embedding"], src.T, axis=0)              # (B, S, E)
    x = x + enc["pe"][:S][None, :, :]
    for lp in enc["layers"]:
        x = encoder_layer(lp, x, enc["num_heads"])
    memory = x                                                 # (B, S, E)

    # ---------------- Decoder ----------------
    T, _ = tgt.shape
    y = jnp.take(dec["embedding"], tgt.T, axis=0)              # (B, T, E)
    y = y + dec["pe"][:T][None, :, :]
    for lp in dec["layers"]:
        y = decoder_layer(lp, y, memory, dec["num_heads"])

    E = y.shape[-1]
    V = dec["proj_w"].shape[1]
    out = proj_logsoftmax(y.reshape(B * T, E), dec["proj_w"], dec["proj_b"])
    return out.reshape(B, T, V).transpose(1, 0, 2)             # (T, B, V)


# ----------------------------------------------------------------------------
# Deterministic parameter initialization
# ----------------------------------------------------------------------------
def _xavier(key, fan_in, fan_out):
    limit = math.sqrt(6.0 / (fan_in + fan_out))
    return jax.random.uniform(key, (fan_in, fan_out), jnp.float32, -limit, limit)


def _default_linear(key, fan_in, fan_out):
    limit = 1.0 / math.sqrt(fan_in)
    kw, kb = jax.random.split(key)
    w = jax.random.uniform(kw, (fan_in, fan_out), jnp.float32, -limit, limit)
    b = jax.random.uniform(kb, (fan_out,), jnp.float32, -limit, limit)
    return w, b


def init_mha(key, embed_dim):
    ks = jax.random.split(key, 4)
    return {
        "wq": _xavier(ks[0], embed_dim, embed_dim),
        "bq": jnp.zeros((embed_dim,), jnp.float32),
        "wk": _xavier(ks[1], embed_dim, embed_dim),
        "bk": jnp.zeros((embed_dim,), jnp.float32),
        "wv": _xavier(ks[2], embed_dim, embed_dim),
        "bv": jnp.zeros((embed_dim,), jnp.float32),
        "wo": _xavier(ks[3], embed_dim, embed_dim),
        "bo": jnp.zeros((embed_dim,), jnp.float32),
    }


def init_encoder_layer(key, embed_dim, ffn_dim):
    ks = jax.random.split(key, 3)
    w1, b1 = _default_linear(ks[1], embed_dim, ffn_dim)
    w2, b2 = _default_linear(ks[2], ffn_dim, embed_dim)
    return {
        "self_attn": init_mha(ks[0], embed_dim),
        "ffn_w1": w1, "ffn_b1": b1, "ffn_w2": w2, "ffn_b2": b2,
        "ln1_g": jnp.ones((embed_dim,), jnp.float32),
        "ln1_b": jnp.zeros((embed_dim,), jnp.float32),
        "ln2_g": jnp.ones((embed_dim,), jnp.float32),
        "ln2_b": jnp.zeros((embed_dim,), jnp.float32),
    }


def init_decoder_layer(key, embed_dim, ffn_dim):
    ks = jax.random.split(key, 4)
    w1, b1 = _default_linear(ks[2], embed_dim, ffn_dim)
    w2, b2 = _default_linear(ks[3], ffn_dim, embed_dim)
    return {
        "self_attn": init_mha(ks[0], embed_dim),
        "encdec_attn": init_mha(ks[1], embed_dim),
        "ffn_w1": w1, "ffn_b1": b1, "ffn_w2": w2, "ffn_b2": b2,
        "ln1_g": jnp.ones((embed_dim,), jnp.float32),
        "ln1_b": jnp.zeros((embed_dim,), jnp.float32),
        "ln2_g": jnp.ones((embed_dim,), jnp.float32),
        "ln2_b": jnp.zeros((embed_dim,), jnp.float32),
        "ln3_g": jnp.ones((embed_dim,), jnp.float32),
        "ln3_b": jnp.zeros((embed_dim,), jnp.float32),
    }


def init_transformer(key, encoder_config, decoder_config, max_len=5000):
    ke, kd = jax.random.split(key)

    ec = encoder_config
    keys = jax.random.split(ke, ec["num_layers"] + 1)
    encoder = {
        "num_heads": ec["num_heads"],
        "embedding": jax.random.normal(
            keys[0], (ec["vocab_size"], ec["embed_dim"]), jnp.float32),
        "pe": positional_encoding(max_len, ec["embed_dim"]),
        "layers": [
            init_encoder_layer(keys[i + 1], ec["embed_dim"], ec["ffn_dim"])
            for i in range(ec["num_layers"])
        ],
    }

    dc = decoder_config
    keys = jax.random.split(kd, dc["num_layers"] + 2)
    pw, pb = _default_linear(keys[-1], dc["embed_dim"], dc["vocab_size"])
    decoder = {
        "num_heads": dc["num_heads"],
        "embedding": jax.random.normal(
            keys[0], (dc["vocab_size"], dc["embed_dim"]), jnp.float32),
        "pe": positional_encoding(max_len, dc["embed_dim"]),
        "layers": [
            init_decoder_layer(keys[i + 1], dc["embed_dim"], dc["ffn_dim"])
            for i in range(dc["num_layers"])
        ],
        "proj_w": pw,
        "proj_b": pb,
    }
    return {"encoder": encoder, "decoder": decoder}


# ----------------------------------------------------------------------------
if __name__ == "__main__":
    # Small, self-consistent configuration.
    encoder_config = dict(num_layers=2, embed_dim=32, ffn_dim=64, num_heads=4, vocab_size=50)
    decoder_config = dict(num_layers=2, embed_dim=32, ffn_dim=64, num_heads=4, vocab_size=50)

    key = jax.random.PRNGKey(0)
    kp, ks, kt = jax.random.split(key, 3)

    params = init_transformer(kp, encoder_config, decoder_config, max_len=64)

    src_len, tgt_len, batch = 8, 8, 2
    src = jax.random.randint(ks, (src_len, batch), 0, encoder_config["vocab_size"], dtype=jnp.int32)
    tgt = jax.random.randint(kt, (tgt_len, batch), 0, decoder_config["vocab_size"], dtype=jnp.int32)

    # TODO(synk): dropout layers (p=0.0 here) are identity and are not implemented as kernels.
    out = transformer_forward(params, src, tgt)
    out = jax.block_until_ready(out)

    assert out.shape == (tgt_len, batch, decoder_config["vocab_size"])
    assert bool(jnp.all(jnp.isfinite(out)))
    # log-softmax rows must sum to ~1 in prob space
    assert bool(jnp.allclose(jnp.sum(jnp.exp(out), axis=-1), 1.0, atol=1e-4))
    print("KERNEL_OK")
</pallas_src>

<mosaic_0001>
module attributes {stable_mosaic.version = 11 : i64} {
  func.func @_mha_addnorm_kernel(%arg0: i32, %arg1: memref<1x8x32xf32, #tpu.memory_space<vmem>>, %arg2: memref<1x8x32xf32, #tpu.memory_space<vmem>>, %arg3: memref<32x32xf32, #tpu.memory_space<vmem>>, %arg4: memref<1x32xf32, #tpu.memory_space<vmem>>, %arg5: memref<32x32xf32, #tpu.memory_space<vmem>>, %arg6: memref<1x32xf32, #tpu.memory_space<vmem>>, %arg7: memref<32x32xf32, #tpu.memory_space<vmem>>, %arg8: memref<1x32xf32, #tpu.memory_space<vmem>>, %arg9: memref<32x32xf32, #tpu.memory_space<vmem>>, %arg10: memref<1x32xf32, #tpu.memory_space<vmem>>, %arg11: memref<1x32xf32, #tpu.memory_space<vmem>>, %arg12: memref<1x32xf32, #tpu.memory_space<vmem>>, %arg13: memref<1x8x32xf32, #tpu.memory_space<vmem>>) attributes {dimension_semantics = [#tpu.dimension_semantics<parallel>], iteration_bounds = array<i64: 2>, scalar_prefetch = 0 : i64, scratch_operands = 0 : i64, tpu.core_type = #tpu.core_type<tc>, window_params = [{transform_indices = @transform_0, window_bounds = array<i64: 1, 8, 32>}, {transform_indices = @transform_1, window_bounds = array<i64: 1, 8, 32>}, {pipeline_mode = #tpu.pipeline_mode<synchronous>, transform_indices = @transform_2, window_bounds = array<i64: 32, 32>}, {pipeline_mode = #tpu.pipeline_mode<synchronous>, transform_indices = @transform_3, window_bounds = array<i64: 1, 32>}, {pipeline_mode = #tpu.pipeline_mode<synchronous>, transform_indices = @transform_4, window_bounds = array<i64: 32, 32>}, {pipeline_mode = #tpu.pipeline_mode<synchronous>, transform_indices = @transform_5, window_bounds = array<i64: 1, 32>}, {pipeline_mode = #tpu.pipeline_mode<synchronous>, transform_indices = @transform_6, window_bounds = array<i64: 32, 32>}, {pipeline_mode = #tpu.pipeline_mode<synchronous>, transform_indices = @transform_7, window_bounds = array<i64: 1, 32>}, {pipeline_mode = #tpu.pipeline_mode<synchronous>, transform_indices = @transform_8, window_bounds = array<i64: 32, 32>}, {pipeline_mode = #tpu.pipeline_mode<synchronous>, transform_indices = @transform_9, window_bounds = array<i64: 1, 32>}, {pipeline_mode = #tpu.pipeline_mode<synchronous>, transform_indices = @transform_10, window_bounds = array<i64: 1, 32>}, {pipeline_mode = #tpu.pipeline_mode<synchronous>, transform_indices = @transform_11, window_bounds = array<i64: 1, 32>}, {transform_indices = @transform_12, window_bounds = array<i64: 1, 8, 32>}]} {
    %c0 = arith.constant 0 : index
    %c0_0 = arith.constant 0 : index
    %c0_1 = arith.constant 0 : index
    %0 = vector.load %arg1[%c0, %c0_0, %c0_1] : memref<1x8x32xf32, #tpu.memory_space<vmem>>, vector<1x8x32xf32>
    %1 = vector.shape_cast %0 : vector<1x8x32xf32> to vector<8x32xf32>
    %c0_2 = arith.constant 0 : index
    %c0_3 = arith.constant 0 : index
    %c0_4 = arith.constant 0 : index
    %2 = vector.load %arg2[%c0_2, %c0_3, %c0_4] : memref<1x8x32xf32, #tpu.memory_space<vmem>>, vector<1x8x32xf32>
    %3 = vector.shape_cast %2 : vector<1x8x32xf32> to vector<8x32xf32>
    %c0_5 = arith.constant 0 : index
    %c0_6 = arith.constant 0 : index
    %4 = vector.load %arg3[%c0_5, %c0_6] : memref<32x32xf32, #tpu.memory_space<vmem>>, vector<32x32xf32>
    %cst = arith.constant dense<0.000000e+00> : vector<8x32xf32>
    %5 = tpu.matmul %1, %4, %cst {dimension_numbers = #tpu.dot_dimension_numbers<[1], [0], [0], [1], [0, 0, 1, 1], [], []>} : vector<8x32xf32>, vector<32x32xf32>, vector<8x32xf32> -> vector<8x32xf32>
    %c0_7 = arith.constant 0 : index
    %c0_8 = arith.constant 0 : index
    %6 = vector.load %arg4[%c0_7, %c0_8] : memref<1x32xf32, #tpu.memory_space<vmem>>, vector<1x32xf32>
    %7 = vector.broadcast %6 : vector<1x32xf32> to vector<8x32xf32>
    %8 = arith.addf %5, %7 : vector<8x32xf32>
    %cst_9 = arith.constant 0.353553385 : f32
    %9 = vector.broadcast %cst_9 : f32 to vector<8x32xf32>
    %10 = arith.mulf %8, %9 : vector<8x32xf32>
    %c0_10 = arith.constant 0 : index
    %c0_11 = arith.constant 0 : index
    %11 = vector.load %arg5[%c0_10, %c0_11] : memref<32x32xf32, #tpu.memory_space<vmem>>, vector<32x32xf32>
    %cst_12 = arith.constant dense<0.000000e+00> : vector<8x32xf32>
    %12 = tpu.matmul %3, %11, %cst_12 {dimension_numbers = #tpu.dot_dimension_numbers<[1], [0], [0], [1], [0, 0, 1, 1], [], []>} : vector<8x32xf32>, vector<32x32xf32>, vector<8x32xf32> -> vector<8x32xf32>
    %c0_13 = arith.constant 0 : index
    %c0_14 = arith.constant 0 : index
    %13 = vector.load %arg6[%c0_13, %c0_14] : memref<1x32xf32, #tpu.memory_space<vmem>>, vector<1x32xf32>
    %14 = vector.broadcast %13 : vector<1x32xf32> to vector<8x32xf32>
    %15 = arith.addf %12, %14 : vector<8x32xf32>
    %c0_15 = arith.constant 0 : index
    %c0_16 = arith.constant 0 : index
    %16 = vector.load %arg7[%c0_15, %c0_16] : memref<32x32xf32, #tpu.memory_space<vmem>>, vector<32x32xf32>
    %cst_17 = arith.constant dense<0.000000e+00> : vector<8x32xf32>
    %17 = tpu.matmul %3, %16, %cst_17 {dimension_numbers = #tpu.dot_dimension_numbers<[1], [0], [0], [1], [0, 0, 1, 1], [], []>} : vector<8x32xf32>, vector<32x32xf32>, vector<8x32xf32> -> vector<8x32xf32>
    %c0_18 = arith.constant 0 : index
    %c0_19 = arith.constant 0 : index
    %18 = vector.load %arg8[%c0_18, %c0_19] : memref<1x32xf32, #tpu.memory_space<vmem>>, vector<1x32xf32>
    %19 = vector.broadcast %18 : vector<1x32xf32> to vector<8x32xf32>
    %20 = arith.addf %17, %19 : vector<8x32xf32>
    %c0_20 = arith.constant 0 : index
    %c0_21 = arith.constant 0 : index
    %21 = vector.load %arg9[%c0_20, %c0_21] : memref<32x32xf32, #tpu.memory_space<vmem>>, vector<32x32xf32>
    %22 = vector.extract_strided_slice %10 {offsets = [0, 0], sizes = [8, 8], strides = [1, 1]} : vector<8x32xf32> to vector<8x8xf32>
    %23 = vector.extract_strided_slice %15 {offsets = [0, 0], sizes = [8, 8], strides = [1, 1]} : vector<8x32xf32> to vector<8x8xf32>
    %24 = vector.extract_strided_slice %20 {offsets = [0, 0], sizes = [8, 8], strides = [1, 1]} : vector<8x32xf32> to vector<8x8xf32>
    %cst_22 = arith.constant dense<0.000000e+00> : vector<8x8xf32>
    %25 = tpu.matmul %22, %23, %cst_22 {dimension_numbers = #tpu.dot_dimension_numbers<[1], [1], [0], [0], [0, 0, 1, 0], [], []>} : vector<8x8xf32>, vector<8x8xf32>, vector<8x8xf32> -> vector<8x8xf32>
    %cst_23 = arith.constant dense<0xFF800000> : vector<8xf32>
    %26 = vector.multi_reduction <maximumf>, %25, %cst_23 [1] : vector<8x8xf32> to vector<8xf32>
    %27 = vector.shape_cast %26 : vector<8xf32> to vector<8x1xf32>
    %28 = vector.broadcast %27 : vector<8x1xf32> to vector<8x8xf32>
    %29 = arith.subf %25, %28 : vector<8x8xf32>
    %30 = math.exp %29 : vector<8x8xf32>
    %cst_24 = arith.constant dense<0.000000e+00> : vector<8xf32>
    %31 = vector.multi_reduction <add>, %30, %cst_24 [1] : vector<8x8xf32> to vector<8xf32>
    %32 = vector.shape_cast %31 : vector<8xf32> to vector<8x1xf32>
    %33 = tpu.reciprocal %32 {approx = true} : vector<8x1xf32> -> vector<8x1xf32>
    %34 = vector.broadcast %33 : vector<8x1xf32> to vector<8x8xf32>
    %35 = arith.mulf %30, %34 : vector<8x8xf32>
    %cst_25 = arith.constant dense<0.000000e+00> : vector<8x8xf32>
    %36 = tpu.matmul %35, %24, %cst_25 {dimension_numbers = #tpu.dot_dimension_numbers<[1], [0], [0], [1], [0, 0, 1, 1], [], []>} : vector<8x8xf32>, vector<8x8xf32>, vector<8x8xf32> -> vector<8x8xf32>
    %37 = vector.extract_strided_slice %21 {offsets = [0, 0], sizes = [8, 32], strides = [1, 1]} : vector<32x32xf32> to vector<8x32xf32>
    %cst_26 = arith.constant dense<0.000000e+00> : vector<8x32xf32>
    %38 = tpu.matmul %36, %37, %cst_26 {dimension_numbers = #tpu.dot_dimension_numbers<[1], [0], [0], [1], [0, 0, 1, 1], [], []>} : vector<8x8xf32>, vector<8x32xf32>, vector<8x32xf32> -> vector<8x32xf32>
    %39 = vector.extract_strided_slice %10 {offsets = [0, 8], sizes = [8, 8], strides = [1, 1]} : vector<8x32xf32> to vector<8x8xf32>
    %40 = vector.extract_strided_slice %15 {offsets = [0, 8], sizes = [8, 8], strides = [1, 1]} : vector<8x32xf32> to vector<8x8xf32>
    %41 = vector.extract_strided_slice %20 {offsets = [0, 8], sizes = [8, 8], strides = [1, 1]} : vector<8x32xf32> to vector<8x8xf32>
    %cst_27 = arith.constant dense<0.000000e+00> : vector<8x8xf32>
    %42 = tpu.matmul %39, %40, %cst_27 {dimension_numbers = #tpu.dot_dimension_numbers<[1], [1], [0], [0], [0, 0, 1, 0], [], []>} : vector<8x8xf32>, vector<8x8xf32>, vector<8x8xf32> -> vector<8x8xf32>
    %cst_28 = arith.constant dense<0xFF800000> : vector<8xf32>
    %43 = vector.multi_reduction <maximumf>, %42, %cst_28 [1] : vector<8x8xf32> to vector<8xf32>
    %44 = vector.shape_cast %43 : vector<8xf32> to vector<8x1xf32>
    %45 = vector.broadcast %44 : vector<8x1xf32> to vector<8x8xf32>
    %46 = arith.subf %42, %45 : vector<8x8xf32>
    %47 = math.exp %46 : vector<8x8xf32>
    %cst_29 = arith.constant dense<0.000000e+00> : vector<8xf32>
    %48 = vector.multi_reduction <add>, %47, %cst_29 [1] : vector<8x8xf32> to vector<8xf32>
    %49 = vector.shape_cast %48 : vector<8xf32> to vector<8x1xf32>
    %50 = tpu.reciprocal %49 {approx = true} : vector<8x1xf32> -> vector<8x1xf32>
    %51 = vector.broadcast %50 : vector<8x1xf32> to vector<8x8xf32>
    %52 = arith.mulf %47, %51 : vector<8x8xf32>
    %cst_30 = arith.constant dense<0.000000e+00> : vector<8x8xf32>
    %53 = tpu.matmul %52, %41, %cst_30 {dimension_numbers = #tpu.dot_dimension_numbers<[1], [0], [0], [1], [0, 0, 1, 1], [], []>} : vector<8x8xf32>, vector<8x8xf32>, vector<8x8xf32> -> vector<8x8xf32>
    %54 = vector.extract_strided_slice %21 {offsets = [8, 0], sizes = [8, 32], strides = [1, 1]} : vector<32x32xf32> to vector<8x32xf32>
    %cst_31 = arith.constant dense<0.000000e+00> : vector<8x32xf32>
    %55 = tpu.matmul %53, %54, %cst_31 {dimension_numbers = #tpu.dot_dimension_numbers<[1], [0], [0], [1], [0, 0, 1, 1], [], []>} : vector<8x8xf32>, vector<8x32xf32>, vector<8x32xf32> -> vector<8x32xf32>
    %56 = arith.addf %38, %55 : vector<8x32xf32>
    %57 = vector.extract_strided_slice %10 {offsets = [0, 16], sizes = [8, 8], strides = [1, 1]} : vector<8x32xf32> to vector<8x8xf32>
    %58 = vector.extract_strided_slice %15 {offsets = [0, 16], sizes = [8, 8], strides = [1, 1]} : vector<8x32xf32> to vector<8x8xf32>
    %59 = vector.extract_strided_slice %20 {offsets = [0, 16], sizes = [8, 8], strides = [1, 1]} : vector<8x32xf32> to vector<8x8xf32>
    %cst_32 = arith.constant dense<0.000000e+00> : vector<8x8xf32>
    %60 = tpu.matmul %57, %58, %cst_32 {dimension_numbers = #tpu.dot_dimension_numbers<[1], [1], [0], [0], [0, 0, 1, 0], [], []>} : vector<8x8xf32>, vector<8x8xf32>, vector<8x8xf32> -> vector<8x8xf32>
    %cst_33 = arith.constant dense<0xFF800000> : vector<8xf32>
    %61 = vector.multi_reduction <maximumf>, %60, %cst_33 [1] : vector<8x8xf32> to vector<8xf32>
    %62 = vector.shape_cast %61 : vector<8xf32> to vector<8x1xf32>
    %63 = vector.broadcast %62 : vector<8x1xf32> to vector<8x8xf32>
    %64 = arith.subf %60, %63 : vector<8x8xf32>
    %65 = math.exp %64 : vector<8x8xf32>
    %cst_34 = arith.constant dense<0.000000e+00> : vector<8xf32>
    %66 = vector.multi_reduction <add>, %65, %cst_34 [1] : vector<8x8xf32> to vector<8xf32>
    %67 = vector.shape_cast %66 : vector<8xf32> to vector<8x1xf32>
    %68 = tpu.reciprocal %67 {approx = true} : vector<8x1xf32> -> vector<8x1xf32>
    %69 = vector.broadcast %68 : vector<8x1xf32> to vector<8x8xf32>
    %70 = arith.mulf %65, %69 : vector<8x8xf32>
    %cst_35 = arith.constant dense<0.000000e+00> : vector<8x8xf32>
    %71 = tpu.matmul %70, %59, %cst_35 {dimension_numbers = #tpu.dot_dimension_numbers<[1], [0], [0], [1], [0, 0, 1, 1], [], []>} : vector<8x8xf32>, vector<8x8xf32>, vector<8x8xf32> -> vector<8x8xf32>
    %72 = vector.extract_strided_slice %21 {offsets = [16, 0], sizes = [8, 32], strides = [1, 1]} : vector<32x32xf32> to vector<8x32xf32>
    %cst_36 = arith.constant dense<0.000000e+00> : vector<8x32xf32>
    %73 = tpu.matmul %71, %72, %cst_36 {dimension_numbers = #tpu.dot_dimension_numbers<[1], [0], [0], [1], [0, 0, 1, 1], [], []>} : vector<8x8xf32>, vector<8x32xf32>, vector<8x32xf32> -> vector<8x32xf32>
    %74 = arith.addf %56, %73 : vector<8x32xf32>
    %75 = vector.extract_strided_slice %10 {offsets = [0, 24], sizes = [8, 8], strides = [1, 1]} : vector<8x32xf32> to vector<8x8xf32>
    %76 = vector.extract_strided_slice %15 {offsets = [0, 24], sizes = [8, 8], strides = [1, 1]} : vector<8x32xf32> to vector<8x8xf32>
    %77 = vector.extract_strided_slice %20 {offsets = [0, 24], sizes = [8, 8], strides = [1, 1]} : vector<8x32xf32> to vector<8x8xf32>
    %cst_37 = arith.constant dense<0.000000e+00> : vector<8x8xf32>
    %78 = tpu.matmul %75, %76, %cst_37 {dimension_numbers = #tpu.dot_dimension_numbers<[1], [1], [0], [0], [0, 0, 1, 0], [], []>} : vector<8x8xf32>, vector<8x8xf32>, vector<8x8xf32> -> vector<8x8xf32>
    %cst_38 = arith.constant dense<0xFF800000> : vector<8xf32>
    %79 = vector.multi_reduction <maximumf>, %78, %cst_38 [1] : vector<8x8xf32> to vector<8xf32>
    %80 = vector.shape_cast %79 : vector<8xf32> to vector<8x1xf32>
    %81 = vector.broadcast %80 : vector<8x1xf32> to vector<8x8xf32>
    %82 = arith.subf %78, %81 : vector<8x8xf32>
    %83 = math.exp %82 : vector<8x8xf32>
    %cst_39 = arith.constant dense<0.000000e+00> : vector<8xf32>
    %84 = vector.multi_reduction <add>, %83, %cst_39 [1] : vector<8x8xf32> to vector<8xf32>
    %85 = vector.shape_cast %84 : vector<8xf32> to vector<8x1xf32>
    %86 = tpu.reciprocal %85 {approx = true} : vector<8x1xf32> -> vector<8x1xf32>
    %87 = vector.broadcast %86 : vector<8x1xf32> to vector<8x8xf32>
    %88 = arith.mulf %83, %87 : vector<8x8xf32>
    %cst_40 = arith.constant dense<0.000000e+00> : vector<8x8xf32>
    %89 = tpu.matmul %88, %77, %cst_40 {dimension_numbers = #tpu.dot_dimension_numbers<[1], [0], [0], [1], [0, 0, 1, 1], [], []>} : vector<8x8xf32>, vector<8x8xf32>, vector<8x8xf32> -> vector<8x8xf32>
    %90 = vector.extract_strided_slice %21 {offsets = [24, 0], sizes = [8, 32], strides = [1, 1]} : vector<32x32xf32> to vector<8x32xf32>
    %cst_41 = arith.constant dense<0.000000e+00> : vector<8x32xf32>
    %91 = tpu.matmul %89, %90, %cst_41 {dimension_numbers = #tpu.dot_dimension_numbers<[1], [0], [0], [1], [0, 0, 1, 1], [], []>} : vector<8x8xf32>, vector<8x32xf32>, vector<8x32xf32> -> vector<8x32xf32>
    %92 = arith.addf %74, %91 : vector<8x32xf32>
    %93 = arith.addf %1, %92 : vector<8x32xf32>
    %c0_42 = arith.constant 0 : index
    %c0_43 = arith.constant 0 : index
    %94 = vector.load %arg10[%c0_42, %c0_43] : memref<1x32xf32, #tpu.memory_space<vmem>>, vector<1x32xf32>
    %95 = vector.broadcast %94 : vector<1x32xf32> to vector<8x32xf32>
    %96 = arith.addf %93, %95 : vector<8x32xf32>
    %cst_44 = arith.constant dense<0.000000e+00> : vector<8xf32>
    %97 = vector.multi_reduction <add>, %96, %cst_44 [1] : vector<8x32xf32> to vector<8xf32>
    %98 = vector.shape_cast %97 : vector<8xf32> to vector<8x1xf32>
    %cst_45 = arith.constant 3.200000e+01 : f32
    %99 = vector.broadcast %cst_45 : f32 to vector<8x1xf32>
    %100 = arith.divf %98, %99 : vector<8x1xf32>
    %101 = vector.broadcast %100 : vector<8x1xf32> to vector<8x32xf32>
    %102 = arith.subf %96, %101 : vector<8x32xf32>
    %103 = vector.broadcast %100 : vector<8x1xf32> to vector<8x32xf32>
    %104 = arith.subf %96, %103 : vector<8x32xf32>
    %105 = arith.mulf %102, %104 : vector<8x32xf32>
    %cst_46 = arith.constant dense<0.000000e+00> : vector<8xf32>
    %106 = vector.multi_reduction <add>, %105, %cst_46 [1] : vector<8x32xf32> to vector<8xf32>
    %107 = vector.shape_cast %106 : vector<8xf32> to vector<8x1xf32>
    %cst_47 = arith.constant 3.200000e+01 : f32
    %108 = vector.broadcast %cst_47 : f32 to vector<8x1xf32>
    %109 = arith.divf %107, %108 : vector<8x1xf32>
    %110 = vector.broadcast %100 : vector<8x1xf32> to vector<8x32xf32>
    %111 = arith.subf %96, %110 : vector<8x32xf32>
    %cst_48 = arith.constant 9.99999974E-6 : f32
    %112 = vector.broadcast %cst_48 : f32 to vector<8x1xf32>
    %113 = arith.addf %109, %112 : vector<8x1xf32>
    %114 = math.rsqrt %113 : vector<8x1xf32>
    %115 = vector.broadcast %114 : vector<8x1xf32> to vector<8x32xf32>
    %116 = arith.mulf %111, %115 : vector<8x32xf32>
    %c0_49 = arith.constant 0 : index
    %c0_50 = arith.constant 0 : index
    %117 = vector.load %arg11[%c0_49, %c0_50] : memref<1x32xf32, #tpu.memory_space<vmem>>, vector<1x32xf32>
    %118 = vector.broadcast %117 : vector<1x32xf32> to vector<8x32xf32>
    %119 = arith.mulf %116, %118 : vector<8x32xf32>
    %c0_51 = arith.constant 0 : index
    %c0_52 = arith.constant 0 : index
    %120 = vector.load %arg12[%c0_51, %c0_52] : memref<1x32xf32, #tpu.memory_space<vmem>>, vector<1x32xf32>
    %121 = vector.broadcast %120 : vector<1x32xf32> to vector<8x32xf32>
    %122 = arith.addf %119, %121 : vector<8x32xf32>
    %c0_53 = arith.constant 0 : index
    %c0_54 = arith.constant 0 : index
    %c0_55 = arith.constant 0 : index
    %123 = vector.load %arg13[%c0_53, %c0_54, %c0_55] : memref<1x8x32xf32, #tpu.memory_space<vmem>>, vector<1x8x32xf32>
    %124 = vector.shape_cast %123 : vector<1x8x32xf32> to vector<8x32xf32>
    %125 = vector.shape_cast %122 : vector<8x32xf32> to vector<1x8x32xf32>
    tpu.vector_store %arg13[%c0_53, %c0_54, %c0_55], %125 {strides = array<i32>} : memref<1x8x32xf32, #tpu.memory_space<vmem>>, vector<1x8x32xf32>,
    return
  }
  func.func @transform_0(%arg0: i32) -> (i32, i32, i32) {
    %c0_i32 = arith.constant 0 : i32
    %c0_i32_0 = arith.constant 0 : i32
    %c0_i32_1 = arith.constant 0 : i32
    return %arg0, %c0_i32, %c0_i32_0 : i32, i32, i32
  }
  func.func @transform_1(%arg0: i32) -> (i32, i32, i32) {
    %c0_i32 = arith.constant 0 : i32
    %c0_i32_0 = arith.constant 0 : i32
    %c0_i32_1 = arith.constant 0 : i32
    return %arg0, %c0_i32, %c0_i32_0 : i32, i32, i32
  }
  func.func @transform_2(%arg0: i32) -> (i32, i32) {
    %c0_i32 = arith.constant 0 : i32
    %c0_i32_0 = arith.constant 0 : i32
    %c0_i32_1 = arith.constant 0 : i32
    return %c0_i32, %c0_i32_0 : i32, i32
  }
  func.func @transform_3(%arg0: i32) -> (i32, i32) {
    %c0_i32 = arith.constant 0 : i32
    %c0_i32_0 = arith.constant 0 : i32
    %c0_i32_1 = arith.constant 0 : i32
    return %c0_i32, %c0_i32_0 : i32, i32
  }
  func.func @transform_4(%arg0: i32) -> (i32, i32) {
    %c0_i32 = arith.constant 0 : i32
    %c0_i32_0 = arith.constant 0 : i32
    %c0_i32_1 = arith.constant 0 : i32
    return %c0_i32, %c0_i32_0 : i32, i32
  }
  func.func @transform_5(%arg0: i32) -> (i32, i32) {
    %c0_i32 = arith.constant 0 : i32
    %c0_i32_0 = arith.constant 0 : i32
    %c0_i32_1 = arith.constant 0 : i32
    return %c0_i32, %c0_i32_0 : i32, i32
  }
  func.func @transform_6(%arg0: i32) -> (i32, i32) {
    %c0_i32 = arith.constant 0 : i32
    %c0_i32_0 = arith.constant 0 : i32
    %c0_i32_1 = arith.constant 0 : i32
    return %c0_i32, %c0_i32_0 : i32, i32
  }
  func.func @transform_7(%arg0: i32) -> (i32, i32) {
    %c0_i32 = arith.constant 0 : i32
    %c0_i32_0 = arith.constant 0 : i32
    %c0_i32_1 = arith.constant 0 : i32
    return %c0_i32, %c0_i32_0 : i32, i32
  }
  func.func @transform_8(%arg0: i32) -> (i32, i32) {
    %c0_i32 = arith.constant 0 : i32
    %c0_i32_0 = arith.constant 0 : i32
    %c0_i32_1 = arith.constant 0 : i32
    return %c0_i32, %c0_i32_0 : i32, i32
  }
  func.func @transform_9(%arg0: i32) -> (i32, i32) {
    %c0_i32 = arith.constant 0 : i32
    %c0_i32_0 = arith.constant 0 : i32
    %c0_i32_1 = arith.constant 0 : i32
    return %c0_i32, %c0_i32_0 : i32, i32
  }
  func.func @transform_10(%arg0: i32) -> (i32, i32) {
    %c0_i32 = arith.constant 0 : i32
    %c0_i32_0 = arith.constant 0 : i32
    %c0_i32_1 = arith.constant 0 : i32
    return %c0_i32, %c0_i32_0 : i32, i32
  }
  func.func @transform_11(%arg0: i32) -> (i32, i32) {
    %c0_i32 = arith.constant 0 : i32
    %c0_i32_0 = arith.constant 0 : i32
    %c0_i32_1 = arith.constant 0 : i32
    return %c0_i32, %c0_i32_0 : i32, i32
  }
  func.func @transform_12(%arg0: i32) -> (i32, i32, i32) {
    %c0_i32 = arith.constant 0 : i32
    %c0_i32_0 = arith.constant 0 : i32
    %c0_i32_1 = arith.constant 0 : i32
    return %arg0, %c0_i32, %c0_i32_0 : i32, i32, i32
  }
}

</mosaic_0001>

<bundles_post_ra>
// kernel: tpu_custom_call.1
= control target key start
LH: loop header
LB: loop body
LE: loop exit
PB: predicated region body
PF: predicated region fallthrough
CT: control target
= control target key end

     0   :  { %s3022_s0 = inlined_call_operand.hbm [shape: f32[2,8,32], index: 0, kind: input, shape index: {}]   ;;  %s3023_s1 = inlined_call_operand.hbm [shape: f32[2,8,32], index: 1, kind: input, shape index: {}]   ;;  %s3024_s2 = inlined_call_operand.hbm [shape: f32[32,32], index: 2, kind: input, shape index: {}]   ;;  %s3025_s3 = inlined_call_operand.vmem [shape: f32[1,32], index: 3, kind: input, shape index: {}]   ;;  %s3026_s4 = inlined_call_operand.hbm [shape: f32[32,32], index: 4, kind: input, shape index: {}]   ;;  %s3027_s5 = inlined_call_operand.vmem [shape: f32[1,32], index: 5, kind: input, shape index: {}]   ;;  %s3028_s6 = inlined_call_operand.hbm [shape: f32[32,32], index: 6, kind: input, shape index: {}]   ;;  %s3029_s7 = inlined_call_operand.vmem [shape: f32[1,32], index: 7, kind: input, shape index: {}]   ;;  %s3030_s8 = inlined_call_operand.hbm [shape: f32[32,32], index: 8, kind: input, shape index: {}]   ;;  %s3031_s9 = inlined_call_operand.vmem [shape: f32[1,32], index: 9, kind: input, shape index: {}]   ;;  %s3032_s10 = inlined_call_operand.vmem [shape: f32[1,32], index: 10, kind: input, shape index: {}]   ;;  %s3033_s11 = inlined_call_operand.vmem [shape: f32[1,32], index: 11, kind: input, shape index: {}]   ;;  %s3034_s12 = inlined_call_operand.hbm [shape: f32[2,8,32], index: 12, kind: output, shape index: {}]  }
   0x1   :  { %3040 = sst [smem:[#allocation21_spill]] %s3024_s2 }
   0x2   :  { %3041 = sst [smem:[#allocation22_spill]] %s3026_s4 }
   0x3   :  { %3042 = sst [smem:[#allocation23_spill]] %s3028_s6 }
   0x4   :  { %3043 = sst [smem:[#allocation24_spill]] %s3030_s8 }
   0x5   :  { %3044 = sst [smem:[#allocation25_spill]] %s3031_s9 }
   0x6   :  { %3045 = sst [smem:[#allocation26_spill]] %s3032_s10 }
   0x7   :  { %3046 = sst [smem:[#allocation27_spill]] %s3033_s11 }
   0x8   :  { %3047 = sst [smem:[#allocation28_spill]] %s3034_s12 }
   0x9   :  { %17 = vsyncpa [#allocation3], 0 }
   0xa   :  { %19 = vsyncpa [#allocation3 + $0x1], 0 }
   0xb   :  { %20 = vsyncpa [#allocation6], 0 }
   0xc   :  { %22 = vsyncpa [#allocation6 + $0x1], 0 }
   0xd   :  { %23 = vsyncpa [#allocation9], 0 }
   0xe   :  { %24 = vsyncpa [#allocation12], 0 }
   0xf   :  { %25 = vsyncpa [#allocation4], 0 }
  0x10   :  { %27 = vsyncpa [#allocation4 + $0x1], 0  ;;  %s2569_s21 = smov 0   ;;  %s2571_s22 = smov 0  }
  0x11   :  { %s2573_s23 = smov 0   ;;  %s2575_s24 = smov 0  }
  0x12 LB: > { %s2489_s25 = smov [#allocation7]   ;;  %s2590_s27 = sadd.s32 4294967295, %s2487_s24   ;;  %s2487_s24 = sphi %s2575_s24, %s3081_s24   ;;  %s2483_s23 = sphi %s2573_s23, %s3080_s23   ;;  %s2479_s22 = sphi %s2571_s22, %s3079_s22   ;;  %s2475_s21 = sphi %s2569_s21, %s3078_s21  }
  0x13   : > { %s338_s26 = sshll.u32 %s2489_s25, 4  ;;  %p1918_p0 = scmp.ge.s32.totalorder %s2487_s24, 1  ;;  %s2595_s26 = int_to_ptr.vmem [resolvable:$true] %s338_s26 }
  0x14   : > { %p3036_p1 = scmp.eq.s32.totalorder %s2590_s27, 0  ;;  %p326_p2 = scmp.lt.s32.totalorder %s2487_s24, 3 }
  0x15   : > { %s2490_s29 = smov [#allocation8]   ;;  %s2491_s14 = smov [#allocation10]  }
  0x16   : > { %p2597_p3 = pnand %p1918_p0, %p326_p2  ;;  %s354_s30 = sshll.u32 %s2490_s29, 4  ;;  %s2610_s30 = int_to_ptr.vmem [resolvable:$true] %s354_s30 }
  0x17   : > { %s370_s15 = sshll.u32 %s2491_s14, 4  ;;  %s3050_s2 = sld [smem:[#allocation21_spill]]  ;;  %s2612_s15 = int_to_ptr.vmem [resolvable:$true] %s370_s15 }
  0x18   : > { %s3048_s28 = scalar_select %p2597_p3, 1, 0 }
  0x19   : > { %p2137_p5 = pneg %p2597_p3 }
  0x1b   : > { %p2606_p6 = pnand %p2137_p5, %p3036_p1 }
  0x1d   : > { %s2233_s18 = scalar_lea.hbm %s3050_s2, 512  ;;  %p2622_p8 = pneg %p2606_p6 }
  0x1e   : > { %p2234_p7 = scmp.ne.s32.totalorder %s3050_s2, %s2233_s18  ;;  %p2240_p11 = scmp.lt.u32.totalorder %s2233_s18, %s3050_s2 }
  0x20   : > { %p2236_p9 = pnand %p2622_p8, %p2234_p7 }
  0x22   : > { %p2237_p10 = pneg %p2236_p9 }
  0x24   : > { %p2242_p12 = pnand %p2240_p11, %p2237_p10 }
  0x26   : > { %2245 = shalt.err (!%p2242_p12)
}
  0x27   : > { %s2246_s16 = scalar_lea.vmem %s2595_s26, 512  ;;  %p2254_p5 = scmp.lt.s32.totalorder %s2595_s26, %s2595_s26 }
  0x28   : > { %p2247_p13 = scmp.ne.s32.totalorder %s2595_s26, %s2246_s16  ;;  %p2255_p4 = scmp.lt.s32.totalorder %s2246_s16, %s2246_s16 }
  0x2a   : > { %p2249_p0 = pnand %p2247_p13, %p2622_p8  ;;  %p2256_p7 = por %p2255_p4, %p2254_p5 }
  0x2c   : > { %p2250_p2 = pneg %p2249_p0 }
  0x2e   : > { %p2257_p9 = pnand %p2256_p7, %p2250_p2 }
  0x30   : > { %2260 = shalt.err (!%p2257_p9)
}
  0x31   : > { %s2492_s17 = smov 128   ;;  %s2493_s18 = smov 8  }
  0x32   : > { %2140 = dma.hbm_to_vmem [thread:$0]  (!%p2606_p6), %s3050_s2, 512, %s2595_s26, [#allocation6], %s2492_s17, %s2492_s17, %s2493_s18  }
  0x33   : > { %s3052_s4 = sld [smem:[#allocation22_spill]] }
  0x39   : > { %s2261_s16 = scalar_lea.hbm %s3052_s4, 512 }
  0x3a   : > { %p2262_p4 = scmp.ne.s32.totalorder %s3052_s4, %s2261_s16  ;;  %p2268_p12 = scmp.lt.u32.totalorder %s2261_s16, %s3052_s4 }
  0x3c   : > { %p2264_p10 = pnand %p2262_p4, %p2622_p8 }
  0x3e   : > { %p2265_p11 = pneg %p2264_p10 }
  0x40   : > { %p2270_p13 = pnand %p2268_p12, %p2265_p11 }
  0x42   : > { %2273 = shalt.err (!%p2270_p13)
}
  0x43   : > { %s2274_s26 = scalar_lea.vmem %s2610_s30, 512  ;;  %p2282_p7 = scmp.lt.s32.totalorder %s2610_s30, %s2610_s30 }
  0x44   : > { %p2275_p0 = scmp.ne.s32.totalorder %s2610_s30, %s2274_s26  ;;  %p2283_p9 = scmp.lt.s32.totalorder %s2274_s26, %s2274_s26 }
  0x46   : > { %p2277_p2 = pnand %p2275_p0, %p2622_p8  ;;  %p2284_p4 = por %p2283_p9, %p2282_p7 }
  0x48   : > { %p2278_p5 = pneg %p2277_p2 }
  0x4a   : > { %p2285_p10 = pnand %p2284_p4, %p2278_p5 }
  0x4c   : > { %2288 = shalt.err (!%p2285_p10)
}
  0x4d   : > { %2143 = dma.hbm_to_vmem [thread:$0]  (!%p2606_p6), %s3052_s4, 512, %s2610_s30, [#allocation9], %s2492_s17, %s2492_s17, %s2493_s18  }
  0x4e   : > { %s3053_s6 = sld [smem:[#allocation23_spill]] }
  0x54   : > { %s2289_s19 = scalar_lea.hbm %s3053_s6, 512 }
  0x55   : > { %p2290_p11 = scmp.ne.s32.totalorder %s3053_s6, %s2289_s19  ;;  %p2296_p0 = scmp.lt.u32.totalorder %s2289_s19, %s3053_s6 }
  0x57   : > { %p2292_p12 = pnand %p2290_p11, %p2622_p8 }
  0x59   : > { %p2293_p13 = pneg %p2292_p12 }
  0x5b   : > { %p2298_p2 = pnand %p2296_p0, %p2293_p13 }
  0x5d   : > { %2301 = shalt.err (!%p2298_p2)
}
  0x5e   : > { %s2302_s30 = scalar_lea.vmem %s2612_s15, 512  ;;  %p2310_p4 = scmp.lt.s32.totalorder %s2612_s15, %s2612_s15 }
  0x5f   : > { %p2303_p5 = scmp.ne.s32.totalorder %s2612_s15, %s2302_s30  ;;  %p2311_p10 = scmp.lt.s32.totalorder %s2302_s30, %s2302_s30 }
  0x61   : > { %p2305_p7 = pnand %p2303_p5, %p2622_p8  ;;  %p2312_p11 = por %p2311_p10, %p2310_p4 }
  0x63   : > { %p2306_p9 = pneg %p2305_p7 }
  0x65   : > { %p2313_p12 = pnand %p2312_p11, %p2306_p9 }
  0x67   : > { %2316 = shalt.err (!%p2313_p12)
}
  0x68   : > { %2146 = dma.hbm_to_vmem [thread:$0]  (!%p2606_p6), %s3053_s6, 512, %s2612_s15, [#allocation9], %s2492_s17, %s2492_s17, %s2493_s18  }
  0x69   : > { %s2494_s10 = smov [#allocation11]   ;;  %s3054_s8 = sld [smem:[#allocation24_spill]] }
  0x6a   : > { %s386_s11 = sshll.u32 %s2494_s10, 4  ;;  %s387_s11 = int_to_ptr.vmem [resolvable:$true] %s386_s11 }
  0x6f   : > { %s2317_s20 = scalar_lea.hbm %s3054_s8, 512 }
  0x70   : > { %p2318_p13 = scmp.ne.s32.totalorder %s3054_s8, %s2317_s20  ;;  %p2324_p5 = scmp.lt.u32.totalorder %s2317_s20, %s3054_s8 }
  0x72   : > { %p2320_p0 = pnand %p2318_p13, %p2622_p8 }
  0x74   : > { %p2321_p2 = pneg %p2320_p0 }
  0x76   : > { %p2326_p7 = pnand %p2324_p5, %p2321_p2 }
  0x78   : > { %2329 = shalt.err (!%p2326_p7)
}
  0x79   : > { %s2330_s15 = scalar_lea.vmem %s387_s11, 512  ;;  %p2338_p11 = scmp.lt.s32.totalorder %s387_s11, %s387_s11 }
  0x7a   : > { %p2331_p9 = scmp.ne.s32.totalorder %s387_s11, %s2330_s15  ;;  %p2339_p12 = scmp.lt.s32.totalorder %s2330_s15, %s2330_s15 }
  0x7c   : > { %p2333_p4 = pnand %p2331_p9, %p2622_p8  ;;  %p2340_p1 = por %p2339_p12, %p2338_p11 }
  0x7e   : > { %p2334_p10 = pneg %p2333_p4 }
  0x80   : > { %p2341_p3 = pnand %p2340_p1, %p2334_p10 }
  0x82   : > { %2344 = shalt.err (!%p2341_p3)
}
  0x83   : > { %2149 = dma.hbm_to_vmem [thread:$0]  (!%p2606_p6), %s3054_s8, 512, %s387_s11, [#allocation12], %s2492_s17, %s2492_s17, %s2493_s18  }
  0x84   : > { %s1917_s13 = sadd.s32 4294967294, %s2487_s24   ;;  %s2721_s25 = sadd.s32 1, %s2487_s24  }
  0x85   : > { %s37_s10 = ssub.s32 %s2487_s24, %s2721_s25  ;;  %s40_s12 = sadd.s32 1, %s2483_s23 }
  0x86   : > { %p38_p1 = scmp.eq.s32.totalorder %s37_s10, 0  ;;  %p47_p3 = scmp.ne.s32.totalorder %s2483_s23, %s2479_s22 }
  0x87   : > { %p48_p8 = scmp.eq.s32.totalorder %s2487_s24, 0  ;;  %p53_p13 = scmp.ne.s32.totalorder %s2479_s22, %s2475_s21 }
  0x88   : > { %s2732_s19 = scalar_select %p38_p1, %s2483_s23, %s40_s12  }
  0x89   : > { %p2734_p0 = por %p48_p8, %p47_p3  ;;  %p3057_p2 = scmp.eq.s32.totalorder %s2590_s27, 0 }
  0x8a   : > { %3055 = sst [smem:[#allocation20_spill]] %s2732_s19  ;;  %p313_p5 = scmp.eq.s32.totalorder %s2590_s27, 1 }
  0x8b   : > { %p2740_p6 = por %p3057_p2, %p53_p13  ;;  %p319_p7 = scmp.eq.s32.totalorder %s1917_s13, 1 }
  0x8c   : > { %p2165_p9 = scmp.lt.s32.totalorder %s2487_s24, 2  ;;  %s409_s18 = sand.u32 1, %s2483_s23  }
  0x8d   : > { %s3058_s17 = scalar_select %p2740_p6, 1, 0 }
  0x8e   : > { %p2747_p4 = por %p313_p5, %p47_p3  ;;  %p2751_p10 = por %p319_p7, %p53_p13 }
  0x8f   : > { %s2755_s14 = sshll.u32 %s409_s18, 3  ;;  %s1925_s16 = sshll.u32 %s2487_s24, 7 }
  0x90   : > { %s3059_s11 = scalar_select %p2747_p4, 1, 0 }
  0x91   : > { %s3060_s29 = scalar_select %p2751_p10, 1, 0 }
  0x92   : > { %s2761_s26 = scalar_lea.hbm %s3022_s0, %s1925_s16  ;;  %s413_s9 = scalar_lea.vmem [#allocation2], %s2755_s14 }
  0x93   : > { %s420_s13 = sshll.u32 %s413_s9, 4  ;;  %p2768_p11 = pnand %p2165_p9, %p2734_p0  ;;  %s2764_s13 = int_to_ptr.vmem [resolvable:$true] %s420_s13 }
  0x94   : > { %s2775_s30 = scalar_lea.hbm %s3023_s1, %s1925_s16  ;;  %s427_s15 = sand.u32 1, %s2487_s24  }
  0x95   : > { %s410_s4 = scalar_lea.sflag [#allocation3], %s409_s18  ;;  %s2345_s6 = scalar_lea.hbm %s2761_s26, 128 }
  0x96   : > { %p2346_p12 = scmp.ne.s32.totalorder %s2761_s26, %s2345_s6  ;;  %p2347_p1 = pneg %p2768_p11 }
  0x97   : > { %s2350_s8 = scalar_lea.hbm %s3022_s0, 256  ;;  %p2351_p13 = scmp.lt.u32.totalorder %s2761_s26, %s3022_s0 }
  0x98   : > { %p2348_p3 = pnand %p2347_p1, %p2346_p12  ;;  %p2352_p0 = scmp.lt.u32.totalorder %s2350_s8, %s2345_s6 }
  0x99   : > { %p2354_p5 = scmp.lt.u32.totalorder %s2345_s6, %s2761_s26 }
  0x9a   : > { %p2349_p8 = pneg %p2348_p3  ;;  %p2353_p2 = por %p2352_p0, %p2351_p13 }
  0x9c   : > { %p2355_p7 = por %p2354_p5, %p2353_p2 }
  0x9e   : > { %p2356_p9 = pnand %p2355_p7, %p2349_p8 }
  0xa0   : > { %2359 = shalt.err (!%p2356_p9)
}
  0xa1   : > { %s2360_s18 = scalar_lea.vmem %s2764_s13, 128  ;;  %s2495_s16 = smov [#allocation2]  }
  0xa2   : > { %p2361_p12 = scmp.ne.s32.totalorder %s2764_s13, %s2360_s18  ;;  %s2365_s12 = sshll.u32 %s2495_s16, 4  ;;  %s2366_s12 = int_to_ptr.vmem [resolvable:$false] %s2365_s12 }
  0xa3   : > { %s2367_s19 = scalar_lea.vmem %s2366_s12, 256  ;;  %p2368_p4 = scmp.lt.s32.totalorder %s2764_s13, %s2366_s12 }
  0xa4   : > { %p2363_p3 = pnand %p2361_p12, %p2347_p1  ;;  %p2369_p13 = scmp.lt.s32.totalorder %s2367_s19, %s2360_s18 }
  0xa6   : > { %p2364_p10 = pneg %p2363_p3  ;;  %p2370_p0 = por %p2369_p13, %p2368_p4 }
  0xa8   : > { %p2371_p2 = pnand %p2370_p0, %p2364_p10 }
  0xaa   : > { %2374 = shalt.err (!%p2371_p2)
}
  0xab   : > { %2153 = dma.hbm_to_vmem [thread:$0]  (!%p2768_p11), %s2761_s26, 128, %s2764_s13, %s410_s4  }
  0xac   : > { %s431_s6 = scalar_lea.vmem [#allocation5], %s2755_s14  ;;  %s428_s20 = scalar_lea.sflag [#allocation6], %s427_s15 }
  0xad   : > { %s438_s8 = sshll.u32 %s431_s6, 4  ;;  %s2375_s9 = scalar_lea.hbm %s2775_s30, 128  ;;  %s439_s8 = int_to_ptr.vmem [resolvable:$true] %s438_s8 }
  0xae   : > { %p2376_p4 = scmp.ne.s32.totalorder %s2775_s30, %s2375_s9  ;;  %s2380_s16 = scalar_lea.hbm %s3023_s1, 256 }
  0xaf   : > { %p2381_p5 = scmp.lt.u32.totalorder %s2775_s30, %s3023_s1  ;;  %p2382_p7 = scmp.lt.u32.totalorder %s2380_s16, %s2375_s9 }
  0xb0   : > { %p2378_p10 = pnand %p2376_p4, %p2347_p1  ;;  %p2384_p12 = scmp.lt.u32.totalorder %s2375_s9, %s2775_s30 }
  0xb1   : > { %p2383_p9 = por %p2382_p7, %p2381_p5 }
  0xb2   : > { %p2379_p8 = pneg %p2378_p10 }
  0xb3   : > { %p2385_p3 = por %p2384_p12, %p2383_p9 }
  0xb5   : > { %p2386_p13 = pnand %p2385_p3, %p2379_p8 }
  0xb7   : > { %2389 = shalt.err (!%p2386_p13)
}
  0xb8   : > { %s2390_s4 = scalar_lea.vmem %s439_s8, 128  ;;  %s2496_s14 = smov [#allocation5]  }
  0xb9   : > { %p2391_p0 = scmp.ne.s32.totalorder %s439_s8, %s2390_s4  ;;  %s2395_s26 = sshll.u32 %s2496_s14, 4  ;;  %s2396_s26 = int_to_ptr.vmem [resolvable:$false] %s2395_s26 }
  0xba   : > { %s2397_s13 = scalar_lea.vmem %s2396_s26, 256  ;;  %p2398_p10 = scmp.lt.s32.totalorder %s439_s8, %s2396_s26 }
  0xbb   : > { %p2393_p2 = pnand %p2391_p0, %p2347_p1  ;;  %p2399_p6 = scmp.lt.s32.totalorder %s2397_s13, %s2390_s4 }
  0xbd   : > { %p2394_p4 = pneg %p2393_p2  ;;  %p2400_p5 = por %p2399_p6, %p2398_p10 }
  0xbf   : > { %p2401_p7 = pnand %p2400_p5, %p2394_p4 }
  0xc1   : > { %2404 = shalt.err (!%p2401_p7)
}
  0xc2   : > { %2156 = dma.hbm_to_vmem [thread:$0]  (!%p2768_p11), %s2775_s30, 128, %s439_s8, %s428_s20  }
  0xc3   : > { %p3062_p8 = scmp.ne.s32.totalorder %s3048_s28, 0 }
  0xc4   : > { %s2828_s15 = sand.u32 (!%p3062_p8), 1, %s2479_s22   ;;  %p3063_p6 = scmp.ne.s32.totalorder (!%p3062_p8), %s3058_s17, 0 }
  0xc5   : > { %447 = sbr.rel (%p3062_p8) target bundleno = 3117 (0xc2d), region = 68  ;;  %s2831_s6 = sshll.u32 (!%p3062_p8), %s2828_s15, 3 }
  0xc6   : > { %s450_s9 = scalar_lea.sflag (!%p3062_p8), [#allocation3], %s2828_s15  ;;  %s453_s2 = scalar_lea.vmem (!%p3062_p8), [#allocation2], %s2831_s6 }
  0xcc   : > { %2450 = dma.done.wait (%p3063_p6), %s450_s9, 128  }
  0xcd   : > { %2452 = vsyncadd (%p3063_p6), %s450_s9, 4294967168  ;;  %s458_s28 = sand.u32 1, %s2590_s27   ;;  %s462_s30 = scalar_lea.vmem [#allocation5], %s2831_s6 }
  0xce   : > { %s459_s10 = scalar_lea.sflag [#allocation6], %s458_s28 }
  0xcf   : > { %2454 = dma.done.wait (%p3063_p6), %s459_s10, 128  }
  0xd0   : > { %2456 = vsyncadd (%p3063_p6), %s459_s10, 4294967168  ;;  %p3064_p11 = scmp.eq.s32.totalorder %s2590_s27, 0 }
  0xd2   : > { %2458 = dma.done.wait (%p3064_p11), [#allocation6], 512   ;;  %p3065_p1 = pmov %p3064_p11 }
  0xd4   : > { %2460 = vsyncadd (%p3065_p1), [#allocation6], 4294966784  ;;  %p3066_p9 = pmov %p3065_p1 }
  0xd5   : > { %p3067_p12 = pmov %p3065_p1 }
  0xd6   : > { %2462 = dma.done.wait (%p3066_p9), [#allocation9], 1024  }
  0xd7   : > { %2464 = vsyncadd (%p3067_p12), [#allocation9], 4294966272  ;;  %p3068_p3 = pmov %p3065_p1 }
  0xd8   : > { %p3069_p13 = pmov %p3065_p1 }
  0xd9   : > { %2466 = dma.done.wait (%p3068_p3), [#allocation12], 512  }
  0xda   : > { %2468 = vsyncadd (%p3069_p13), [#allocation12], 4294966784  ;;  %v2497_v0 = vmov 0.0|0.0   ;;  %vm2498_vm0 = vmmov 0   ;;  %v2499_v1 = vmov 0.0   ;;  %v612_v2 = vld [vmem:[#allocation8] sm:$0xff] }
  0xdb   : > { %2103 = vmatprep.subr.bf16.mxu1 %v2497_v0  ;;  %2097 = vmatprep.subr.bf16.mxu0 %v2497_v0  ;;  %v613_v3 = vld [vmem:[#allocation8 + $0x8] sm:$0xff]  ;;  %v526_v4 = vld [vmem:[#allocation7] sm:$0xff]  ;;  %v614_v7 = vld [vmem:[#allocation8 + $0x10] sm:$0xff]  ;;  %vm537_vm1 = vcmask 261120   ;;  %vm781_vm2 = vcmask 64512   ;;  %s2500_s16 = smov 120  }
  0xdc   : > { %2023 = vmatprep.mubr.msk.f32.mxu1 %vm2498_vm0, %v2499_v1  ;;  %2012 = vmatprep.mubr.msk.f32.mxu0 %vm2498_vm0, %v2499_v1  ;;  %v2104_v5 = vpack.c.bf16 %v613_v3, %v612_v2  ;;  %v527_v6 = vld [vmem:[#allocation7 + $0x8] sm:$0xff]  ;;  %v615_v8 = vld [vmem:[#allocation8 + $0x18] sm:$0xff]  ;;  %v528_v10 = vld [vmem:[#allocation7 + $0x10] sm:$0xff]  ;;  %s2501_s4 = smov 112   ;;  %s2502_s14 = smov 104  }
  0xdd   : > { %v2098_v9 = vpack.c.bf16 %v527_v6, %v526_v4  ;;  %v529_v11 = vld [vmem:[#allocation7 + $0x18] sm:$0xff]  ;;  %v2107_v12 = vpack.c.bf16 %v615_v8, %v614_v7  ;;  %v2865_v15 = vld [vmem:[%s453_s2] sm:$0xff]  ;;  %v698_v18 = vld [vmem:[#allocation10 + $0x10] sm:$0xff]  ;;  %s3070_s9 = sld [smem:[#allocation25_spill]]  ;;  %s3071_s10 = sld [smem:[#allocation26_spill]] }
  0xde   : > { %2105 = vmatpush3.bf16.msra.mxu1 %v2104_v5  ;;  %v2101_v13 = vpack.c.bf16 %v529_v11, %v528_v10  ;;  %v525_v14 = vld [vmem:[%s462_s30] sm:$0xff]  ;;  %v696_v16 = vld [vmem:[#allocation10] sm:$0xff]  ;;  %v697_v17 = vld [vmem:[#allocation10 + $0x8] sm:$0xff]  ;;  %s3072_s8 = sld [smem:[#allocation27_spill]]  ;;  %s1962_s20 = sshll.u32 %s2590_s27, 7 }
  0xdf   : > { %2099 = vmatpush3.bf16.msra.mxu0 %v2098_v9  ;;  %2106 = vmatprep.subr.bf16.mxu1 %v2497_v0  ;;  %v2110_v19 = vpack.c.bf16 %v697_v17, %v696_v16  ;;  %v699_v20 = vld [vmem:[#allocation10 + $0x18] sm:$0xff]  ;;  %v1938_v22 = vld [vmem:[%s3027_s5] ss:$0 sm:$0xff]  ;;  %v778_v56 = vld [vmem:[#allocation11 + $0x8] sm:$0xff]  ;;  %s523_s18 = scalar_lea.vmem [#allocation13], %s2831_s6  ;;  %s1773_s26 = scalar_lea.sflag [#allocation4], %s2828_s15 }
  0xe0   : > { %2100 = vmatprep.subr.bf16.mxu0 %v2497_v0  ;;  %v2113_v21 = vpack.c.bf16 %v699_v20, %v698_v18  ;;  %v1936_v23 = vld [vmem:[%s3025_s3] ss:$0 sm:$0xff]  ;;  %p3074_p2 = scmp.ne.s32.totalorder %s3059_s11, 0  ;;  %s2503_s27 = smov [#allocation13]  }
  0xe1   : > { %v1940_v31 = vld [vmem:[%s3029_s7] ss:$0 sm:$0xff]  ;;  %s2409_s6 = sshll.u32 %s2503_s27, 4  ;;  %s2410_s6 = int_to_ptr.vmem [resolvable:$false] %s2409_s6 }
  0xe2   : > { %2108 = vmatpush3.bf16.msra.mxu1 %v2107_v12  ;;  %v777_v61 = vld [vmem:[#allocation11] sm:$0xff] }
  0xe3   : > { %2102 = vmatpush3.bf16.msra.mxu0 %v2101_v13  ;;  %2037 = vmatprep.subr.mxu1 %v2499_v1 }
  0xe4   : > { %2109 = vmatprep.subr.bf16.mxu0 %v2497_v0 }
  0xe5   : > { %2024 = vmatmul.mubr.msk.f32.vlgmr.msra.gmra.mrb[0].mxu1 %vm537_vm1, %v525_v14 }
  0xe6   : > { %2013 = vmatmul.mubr.msk.f32.vlgmr.msra.gmra.mrb[0].mxu0 %vm537_vm1, %v2865_v15  ;;  %2039 = vmatprep.mubr.msk.f32.mxu1 %vm2498_vm0, %v2499_v1 }
  0xe7   : > { %2034 = vmatprep.mubr.msk.f32.mxu0 %vm2498_vm0, %v2499_v1  ;;  %2111 = vmatpush3.bf16.msra.mxu0 %v2110_v19 }
  0xe8   : > { %2112 = vmatprep.subr.bf16.mxu0 %v2497_v0 }
  0xeb   : > { %2114 = vmatpush3.bf16.msra.mxu0 %v2113_v21 }
  0xec   : > { %2047 = vmatprep.subr.mxu0 %v2499_v1 }
  0xee   : > { %2035 = vmatmul.mubr.msk.f32.vlgmr.msra.gmra.mrb[2].mxu0 %vm537_vm1, %v525_v14 }
  0xef   : > { %2049 = vmatprep.mubr.msk.f32.mxu0 %vm2498_vm0, %v2499_v1 }
 0x1b8   : > { %v692_v24 = vpop.f32.mrb[0].mxu1 }
 0x1b9   : > { %v693_v25 = vadd.f32 %v1938_v22, %v692_v24  ;;  %v607_v26 = vpop.f32.mrb[0].mxu0  ;;  %v2025_v27 = vpop.f32.mrb[1].mxu1 }
 0x1ba   : > { %v608_v28 = vadd.f32 %v1936_v23, %v607_v26  ;;  %v2014_v29 = vpop.f32.mrb[1].mxu0 }
 0x1bb   : > { %944 = vrot.lane.b32.xlu0 %v693_v25, %s2500_s16  ;;  %2038 = vmatpush3.xpose.msk.msra.mxu1 %vm781_vm2, %v693_v25 }
 0x1bc   : > { %v2887_v30 = vmul.f32 0.35355338, %v608_v28  ;;  %2042 = vmatprep.subr.mxu1 %v2499_v1 }
 0x1be   : > { %2040 = vmatmul.mubr.msk.f32.vlgmr.msra.gmra.mrb[2].mxu1 %vm781_vm2, %v2887_v30 }
 0x1bf   : > { %942 = vrot.lane.b32.xlu0 %v2887_v30, %s2500_s16  ;;  %2044 = vmatprep.mubr.msk.f32.mxu1 %vm2498_vm0, %v2499_v1 }
 0x1c1   : > { %v773_v32 = vpop.f32.mrb[2].mxu0 }
 0x1c2   : > { %v2899_v33 = vadd.f32 %v1940_v31, %v773_v32  ;;  %v2036_v34 = vpop.f32.mrb[3].mxu0 }
 0x1c4   : > { %2043 = vmatpush3.msra.mxu1 %v2899_v33 }
 0x1c5   : > { %2052 = vmatprep.subr.mxu1 %v2499_v1 }
 0x22d   : > { %v945_v35 = vpop.permute.xlu0 %944 }
 0x22e   : > { %2048 = vmatpush3.xpose.msk.msra.mxu0 %vm781_vm2, %v945_v35 }
 0x22f   : > { %2057 = vmatprep.subr.mxu0 %v2499_v1 }
 0x231   : > { %v943_v36 = vpop.permute.xlu0 %942 }
 0x232   : > { %2050 = vmatmul.mubr.msk.f32.vlgmr.msra.gmra.mrb[4].mxu0 %vm781_vm2, %v943_v36 }
 0x233   : > { %2059 = vmatprep.mubr.msk.f32.mxu0 %vm2498_vm0, %v2499_v1  ;;  %2058 = vmatpush3.msra.mxu0 %v778_v56 }
 0x234   : > { %2067 = vmatprep.subr.mxu0 %v2499_v1 }
 0x291   : > { %v854_v37 = vpop.f32.mrb[2].mxu1 }
 0x292   : > { %v2041_v38 = vpop.f32.mrb[3].mxu1  ;;  %v858_v39 = vsel %vm781_vm2, %v854_v37, -inf }
 0x293   : > { %859 = vmax.xlane.f32.xlu1 %v858_v39 }
 0x305   : > { %v1016_v40 = vpop.f32.mrb[4].mxu0 }
 0x306   : > { %v2051_v41 = vpop.f32.mrb[5].mxu0  ;;  %v1020_v42 = vsel %vm781_vm2, %v1016_v40, -inf }
 0x307   : > { %1021 = vmax.xlane.f32.xlu1 %v1020_v42 }
 0x320   : > { %v860_v43 = vpop.xlane.xlu1 %859 }
 0x321   : > { %v861_v44 = vsub.f32 %v854_v37, %v860_v43  ;;  %v780_v37 = vld [vmem:[#allocation11 + $0x18] sm:$0xff] }
 0x323   : > { %v862_v45 = vmul.f32 1.442695, %v861_v44 }
 0x325   : > { %2215 = vpow2.f32 %v862_v45 }
 0x32f   : > { %v2216_v46 = vpop.eup %2215 }
 0x330   : > { %v864_v47 = vsel %vm781_vm2, %v2216_v46, 0.0 }
 0x331   : > { %865 = vadd.xlane.f32.xlu0 %v864_v47 }
 0x347   : > { %1343 = vrot.lane.b32.xlu0 %v2899_v33, %s2501_s4 }
 0x34b   : > { %1495 = vrot.lane.b32.xlu0 %v693_v25, %s2502_s14 }
 0x394   : > { %v1022_v48 = vpop.xlane.xlu1 %1021 }
 0x395   : > { %v1023_v49 = vsub.f32 %v1016_v40, %v1022_v48  ;;  %v1958_v48 = vld [vmem:[%s3070_s9] ss:$0 sm:$0xff]  ;;  %s2411_s9 = scalar_lea.vmem %s2410_s6, 256 }
 0x397   : > { %v1024_v50 = vmul.f32 1.442695, %v1023_v49 }
 0x399   : > { %2217 = vpow2.f32 %v1024_v50 }
 0x3a3   : > { %v2218_v51 = vpop.eup %2217 }
 0x3a4   : > { %v1026_v52 = vsel %vm781_vm2, %v2218_v51, 0.0 }
 0x3a5   : > { %1027 = vadd.xlane.f32.xlu1 %v1026_v52 }
 0x3b6   : > { %1032 = vrot.lane.b32.xlu1 %v2899_v33, %s2500_s16  ;;  %s1786_s16 = sshll.u32 %s523_s18, 4  ;;  %s2979_s16 = int_to_ptr.vmem [resolvable:$true] %s1786_s16 }
 0x3b7   : > { %s2405_s13 = scalar_lea.vmem %s2979_s16, 128  ;;  %p2412_p5 = scmp.lt.s32.totalorder %s2979_s16, %s2410_s6 }
 0x3b8   : > { %p2406_p0 = scmp.ne.s32.totalorder %s2979_s16, %s2405_s13  ;;  %p2413_p7 = scmp.lt.s32.totalorder %s2411_s9, %s2405_s13 }
 0x3ba   : > { %1256 = vrot.lane.b32.xlu1 %v693_v25, %s2501_s4  ;;  %v779_v25 = vld [vmem:[#allocation11 + $0x10] sm:$0xff]  ;;  %p2407_p4 = pnand %p2406_p0, %p3074_p2  ;;  %p2414_p8 = por %p2413_p7, %p2412_p5 }
 0x3bc   : > { %p2408_p10 = pneg %p2407_p4 }
 0x3be   : > { %v866_v53 = vpop.xlane.xlu0 %865  ;;  %1254 = vrot.lane.b32.xlu1 %v2887_v30, %s2501_s4  ;;  %s3073_s4 = sld [smem:[#allocation28_spill]]  ;;  %p2415_p6 = pnand %p2414_p8, %p2408_p10 }
 0x3bf   : > { %2219 = vrcp.f32 %v866_v53 }
 0x3c2   : > { %v1344_v63 = vpop.permute.xlu0 %1343 }
 0x3c6   : > { %v1496_v20 = vpop.permute.xlu0 %1495 }
 0x3c9   : > { %v2220_v54 = vpop.eup %2219 }
 0x3ca   : > { %v868_v55 = vmul.f32 %v2220_v54, %v2216_v46 }
 0x3cc   : > { %2045 = vmatmul.mubr.msk.f32.vlgmr.msra.gmra.mrb[4].mxu1 %vm781_vm2, %v868_v55 }
 0x3cd   : > { %2054 = vmatprep.mubr.msk.f32.mxu1 %vm2498_vm0, %v2499_v1 }
 0x432   : > { %v1028_v57 = vpop.xlane.xlu1 %1027 }
 0x433   : > { %2221 = vrcp.f32 %v1028_v57 }
 0x436   : > { %v1033_v58 = vpop.permute.xlu1 %1032 }
 0x437   : > { %2053 = vmatpush3.msra.mxu1 %v1033_v58 }
 0x438   : > { %2062 = vmatprep.subr.mxu1 %v2499_v1 }
 0x43a   : > { %v1257_v2 = vpop.permute.xlu1 %1256 }
 0x43d   : > { %v2222_v59 = vpop.eup %2221 }
 0x43e   : > { %v1030_v60 = vmul.f32 %v2222_v59, %v2218_v51  ;;  %v1255_v5 = vpop.permute.xlu1 %1254 }
 0x440   : > { %2055 = vmatmul.mubr.msk.f32.vlgmr.msra.gmra.mrb[6].mxu1 %vm781_vm2, %v1030_v60  ;;  %v1959_v60 = vld [vmem:[%s3071_s10] ss:$0 sm:$0xff] }
 0x441   : > { %2063 = vmatpush3.msra.mxu1 %v777_v61  ;;  %2064 = vmatprep.mubr.msk.f32.mxu1 %vm2498_vm0, %v2499_v1 }
 0x442   : > { %2072 = vmatprep.subr.mxu1 %v2499_v1 }
 0x49f   : > { %v938_v62 = vpop.f32.mrb[4].mxu1 }
 0x4a0   : > { %v2046_v0 = vpop.f32.mrb[5].mxu1  ;;  %2065 = vmatmul.mubr.msk.f32.vlgmr.msra.gmra.mrb[8].mxu1 %vm781_vm2, %v938_v62  ;;  %v1960_v62 = vld [vmem:[%s3072_s8] ss:$0 sm:$0xff] }
 0x4a1   : > { %2073 = vmatpush3.msra.mxu1 %v1344_v63  ;;  %2074 = vmatprep.mubr.msk.f32.mxu1 %vm2498_vm0, %v2499_v1 }
 0x4a2   : > { %2082 = vmatprep.subr.mxu1 %v2499_v1 }
 0x513   : > { %v1104_v3 = vpop.f32.mrb[6].mxu1 }
 0x514   : > { %v2056_v4 = vpop.f32.mrb[7].mxu1  ;;  %2060 = vmatmul.mubr.msk.f32.vlgmr.msra.gmra.mrb[6].mxu0 %vm781_vm2, %v1104_v3 }
 0x515   : > { %2068 = vmatpush3.xpose.msk.msra.mxu0 %vm781_vm2, %v1257_v2  ;;  %2069 = vmatprep.mubr.msk.f32.mxu0 %vm2498_vm0, %v2499_v1 }
 0x516   : > { %2077 = vmatprep.subr.mxu0 %v2499_v1 }
 0x518   : > { %2070 = vmatmul.mubr.msk.f32.vlgmr.msra.gmra.mrb[8].mxu0 %vm781_vm2, %v1255_v5 }
 0x519   : > { %2079 = vmatprep.mubr.msk.f32.mxu0 %vm2498_vm0, %v2499_v1  ;;  %2078 = vmatpush3.msra.mxu0 %v779_v25 }
 0x51a   : > { %2087 = vmatprep.subr.mxu0 %v2499_v1 }
 0x573   : > { %v1250_v6 = vpop.f32.mrb[8].mxu1 }
 0x574   : > { %v2066_v7 = vpop.f32.mrb[9].mxu1 }
 0x5e7   : > { %v1177_v8 = vpop.f32.mrb[6].mxu0 }
 0x5e8   : > { %v1251_v9 = vadd.f32 %v1250_v6, %v1177_v8  ;;  %v2061_v10 = vpop.f32.mrb[7].mxu0 }
 0x5eb   : > { %v1328_v11 = vpop.f32.mrb[8].mxu0 }
 0x5ec   : > { %v2071_v12 = vpop.f32.mrb[9].mxu0  ;;  %v1332_v13 = vsel %vm781_vm2, %v1328_v11, -inf }
 0x5ed   : > { %1333 = vmax.xlane.f32.xlu1 %v1332_v13 }
 0x67a   : > { %v1334_v14 = vpop.xlane.xlu1 %1333 }
 0x67b   : > { %v1335_v16 = vsub.f32 %v1328_v11, %v1334_v14 }
 0x67d   : > { %v1336_v17 = vmul.f32 1.442695, %v1335_v16 }
 0x67f   : > { %2223 = vpow2.f32 %v1336_v17 }
 0x689   : > { %v2224_v18 = vpop.eup %2223 }
 0x68a   : > { %v1338_v19 = vsel %vm781_vm2, %v2224_v18, 0.0 }
 0x68b   : > { %1339 = vadd.xlane.f32.xlu0 %v1338_v19 }
 0x6a1   : > { %1493 = vrot.lane.b32.xlu0 %v2887_v30, %s2502_s14 }
 0x718   : > { %v1340_v21 = vpop.xlane.xlu0 %1339 }
 0x719   : > { %2225 = vrcp.f32 %v1340_v21 }
 0x71c   : > { %v1494_v24 = vpop.permute.xlu0 %1493 }
 0x723   : > { %v2226_v22 = vpop.eup %2225 }
 0x724   : > { %v1342_v23 = vmul.f32 %v2226_v22, %v2224_v18 }
 0x726   : > { %2075 = vmatmul.mubr.msk.f32.vlgmr.msra.gmra.mrb[10].mxu1 %vm781_vm2, %v1342_v23 }
 0x727   : > { %2083 = vmatpush3.xpose.msk.msra.mxu1 %vm781_vm2, %v1496_v20  ;;  %2084 = vmatprep.mubr.msk.f32.mxu1 %vm2498_vm0, %v2499_v1 }
 0x728   : > { %2092 = vmatprep.subr.mxu1 %v2499_v1 }
 0x72a   : > { %2085 = vmatmul.mubr.msk.f32.vlgmr.msra.gmra.mrb[12].mxu1 %vm781_vm2, %v1494_v24 }
 0x72b   : > { %2094 = vmatprep.mubr.msk.f32.mxu1 %vm2498_vm0, %v2499_v1  ;;  %2093 = vmatpush3.msra.mxu1 %v780_v37 }
 0x7f9   : > { %v1415_v26 = vpop.f32.mrb[10].mxu1 }
 0x7fa   : > { %v2076_v27 = vpop.f32.mrb[11].mxu1  ;;  %2080 = vmatmul.mubr.msk.f32.vlgmr.msra.gmra.mrb[10].mxu0 %vm781_vm2, %v1415_v26 }
 0x7fb   : > { %2089 = vmatprep.mubr.msk.f32.mxu0 %vm2498_vm0, %v2499_v1 }
 0x7fd   : > { %v1567_v28 = vpop.f32.mrb[12].mxu1 }
 0x7fe   : > { %v2086_v29 = vpop.f32.mrb[13].mxu1  ;;  %v1571_v30 = vsel %vm781_vm2, %v1567_v28, -inf }
 0x7ff   : > { %1572 = vmax.xlane.f32.xlu0 %v1571_v30 }
 0x88c   : > { %v1573_v31 = vpop.xlane.xlu0 %1572 }
 0x88d   : > { %v1574_v32 = vsub.f32 %v1567_v28, %v1573_v31 }
 0x88f   : > { %v1575_v34 = vmul.f32 1.442695, %v1574_v32 }
 0x891   : > { %2227 = vpow2.f32 %v1575_v34 }
 0x89b   : > { %v2228_v35 = vpop.eup %2227 }
 0x89c   : > { %v1577_v36 = vsel %vm781_vm2, %v2228_v35, 0.0 }
 0x89d   : > { %1578 = vadd.xlane.f32.xlu1 %v1577_v36 }
 0x8ae   : > { %1582 = vrot.lane.b32.xlu1 %v2899_v33, %s2502_s14  ;;  %s2977_s14 = scalar_lea.hbm %s3073_s4, %s1962_s20 }
 0x8cd   : > { %v1488_v38 = vpop.f32.mrb[10].mxu0 }
 0x8ce   : > { %v1492_v1 = vadd.f32 %v1488_v38, %v1251_v9  ;;  %v2081_v39 = vpop.f32.mrb[11].mxu0 }
 0x92a   : > { %v1579_v40 = vpop.xlane.xlu1 %1578 }
 0x92b   : > { %2229 = vrcp.f32 %v1579_v40 }
 0x92e   : > { %v1583_v41 = vpop.permute.xlu1 %1582 }
 0x92f   : > { %2088 = vmatpush3.msra.mxu0 %v1583_v41 }
 0x935   : > { %v2230_v42 = vpop.eup %2229 }
 0x936   : > { %v1581_v43 = vmul.f32 %v2230_v42, %v2228_v35 }
 0x938   : > { %2090 = vmatmul.mubr.msk.f32.vlgmr.msra.gmra.mrb[12].mxu0 %vm781_vm2, %v1581_v43 }
 0xa0b   : > { %v1654_v44 = vpop.f32.mrb[12].mxu0 }
 0xa0c   : > { %v2091_v45 = vpop.f32.mrb[13].mxu0  ;;  %2095 = vmatmul.mubr.msk.f32.vlgmr.msra.gmra.mrb[14].mxu1 %vm781_vm2, %v1654_v44 }
 0xadf   : > { %v1727_v46 = vpop.f32.mrb[14].mxu1 }
 0xae0   : > { %v1731_v47 = vadd.f32 %v1727_v46, %v1492_v1  ;;  %v2096_v33 = vpop.f32.mrb[15].mxu1 }
 0xae2   : > { %v1732_v49 = vadd.f32 %v1731_v47, %v2865_v15 }
 0xae4   : > { %v1740_v50 = vadd.f32 %v1958_v48, %v1732_v49 }
 0xae6   : > { %v1741_v51 = vsel %vm537_vm1, %v1740_v50, 0.0 }
 0xae7   : > { %1742 = vadd.xlane.f32.xlu1 %v1741_v51 }
 0xb74   : > { %v1743_v52 = vpop.xlane.xlu1 %1742 }
 0xb75   : > { %v1745_v53 = vmul.f32 0.03125, %v1743_v52 }
 0xb77   : > { %v1746_v54 = vsub.f32 %v1740_v50, %v1745_v53 }
 0xb79   : > { %v1747_v55 = vmul.f32 %v1746_v54, %v1746_v54 }
 0xb7b   : > { %v1748_v56 = vsel %vm537_vm1, %v1747_v55, 0.0 }
 0xb7c   : > { %1749 = vadd.xlane.f32.xlu0 %v1748_v56 }
 0xc09   : > { %v1750_v57 = vpop.xlane.xlu0 %1749 }
 0xc0a   : > { %v1751_v58 = vmul.f32 0.03125, %v1750_v57 }
 0xc0c   : > { %v1752_v59 = vadd.f32 1e-05, %v1751_v58 }
 0xc0e   : > { %2231 = vrsqrt.f32 %v1752_v59 }
 0xc18   : > { %v2232_v15 = vpop.eup %2231 }
 0xc19   : > { %v1754_v61 = vmul.f32 %v2232_v15, %v1746_v54 }
 0xc1b   : > { %v1762_v63 = vmul.f32 %v1959_v60, %v1754_v61 }
 0xc1d   : > { %v1770_v0 = vadd.f32 %v1960_v62, %v1762_v63 }
 0xc1f   : > { %1771 = vst.msk [vmem:[%s523_s18] sm:$0xff] %vm537_vm1, %v1770_v0 }
 0xc20   : > { %2418 = shalt.err (!%p2415_p6)
}
 0xc21   : > { %s2419_s15 = scalar_lea.hbm %s2977_s14, 128  ;;  %s2423_s10 = scalar_lea.hbm %s3073_s4, 256 }
 0xc22   : > { %p2420_p11 = scmp.ne.s32.totalorder %s2977_s14, %s2419_s15  ;;  %p2424_p12 = scmp.lt.u32.totalorder %s2977_s14, %s3073_s4 }
 0xc23   : > { %p2425_p3 = scmp.lt.u32.totalorder %s2423_s10, %s2419_s15  ;;  %p2427_p0 = scmp.lt.u32.totalorder %s2419_s15, %s2977_s14 }
 0xc24   : > { %p2421_p1 = pnand %p2420_p11, %p3074_p2 }
 0xc25   : > { %p2426_p13 = por %p2425_p3, %p2424_p12 }
 0xc26   : > { %p2422_p9 = pneg %p2421_p1 }
 0xc27   : > { %p2428_p4 = por %p2427_p0, %p2426_p13 }
 0xc29   : > { %p2429_p10 = pnand %p2428_p4, %p2422_p9 }
 0xc2b   : > { %2432 = shalt.err (!%p2429_p10)
}
 0xc2c   : > { %2135 = dma.vmem_to_hbm [thread:$0]  (%p3074_p2), %s2979_s16, 128, %s2977_s14, %s1773_s26  }
 0xc2d PF: > { %s1798_s8 = sand.u32 1, %s2475_s21   ;;  %p3075_p5 = scmp.ne.s32.totalorder %s3060_s29, 0 }
 0xc2e   : > { %p3076_p7 = scmp.ge.s32.totalorder %s2487_s24, 2  ;;  %s1799_s20 = scalar_lea.sflag [#allocation4], %s1798_s8 }
 0xc30   : > { %p2158_p8 = pnand %p3076_p7, %p3075_p5 }
 0xc32   : > { %2470 = dma.done.wait (!%p2158_p8), %s1799_s20, 128  }
 0xc33   : > { %2472 = vsyncadd (!%p2158_p8), %s1799_s20, 4294967168  ;;  %s3077_s18 = sld [smem:[#allocation20_spill]]  ;;  %p30_p6 = scmp.ge.s32.totalorder %s2721_s25, 4  }
 0xc34   : > { %s3078_s21 = smov %s2479_s22  ;;  %s3079_s22 = smov %s2483_s23 }
 0xc35   : > { %s3081_s24 = smov %s2721_s25  ;;  %32 = sbr.rel (!%p30_p6) target bundleno = 18 (0x12), region = 142 }
 0xc39   : > { %s3080_s23 = smov %s3077_s18 }
 0xc3c   :  { %1804 = vsyncpa [#allocation3], 1 }
 0xc3d   :  { %1806 = vsyncpa [#allocation3 + $0x1], 1 }
 0xc3e   :  { %1807 = vsyncpa [#allocation6], 1 }
 0xc3f   :  { %1809 = vsyncpa [#allocation6 + $0x1], 1 }
 0xc40   :  { %1810 = vsyncpa [#allocation9], 1 }
 0xc41   :  { %1811 = vsyncpa [#allocation12], 1 }
 0xc42   :  { %1812 = vsyncpa [#allocation4], 1 }
 0xc43   :  { %1814 = vsyncpa [#allocation4 + $0x1], 1 }

</bundles_post_ra>
